<compile_context>
chip_gen: v7x
topology: tpu7x:2x2x1
jax: 0.10.0
libtpu: 0.0.40
codegen_flags: <defaults>
</compile_context>

<pallas_src>
import jax
import jax.numpy as jnp
from jax.experimental import pallas as pl
from jax.experimental.pallas import tpu as pltpu

IN_F = 10          # logical input features
OUT_F = 5          # logical output features
K_PAD = 16         # contraction dim padded to f32 sublane multiple (row IN_F holds the bias)
N_PAD = 128        # output lanes padded to one full vreg lane width


def fused_linear_kernel(x_ref, wf_ref, o_ref, xp_ref):
    # Build padded activations in VMEM scratch:
    #   cols [0, IN_F)   = x
    #   col  IN_F        = 1.0   (multiplies the bias row of wf)
    #   cols (IN_F, K_PAD) = 0.0 (numerically inert)
    col = jax.lax.broadcasted_iota(jnp.int32, xp_ref.shape, 1)
    xp_ref[...] = jnp.where(col == IN_F, 1.0, 0.0).astype(jnp.float32)
    xp_ref[:, :IN_F] = x_ref[...]

    # Single fused matmul: (B, K_PAD) @ (K_PAD, N_PAD); bias already in wf row IN_F.
    y = jnp.dot(xp_ref[...], wf_ref[...], preferred_element_type=jnp.float32)

    # Store only the logical output width (masked vst; negligible at this size).
    o_ref[...] = y[:, :OUT_F]


def prepare_fused_params(w1, b1, w2, b2):
    """Fuse the two Linears and pad to a TPU-friendly shape. Run ONCE at init.

    w1: (IN_F, OUT_F); b1: (1, OUT_F); w2: (OUT_F, OUT_F); b2: (1, OUT_F)
    Returns wf_pad: (K_PAD, N_PAD) f32 with
        rows [0, IN_F)  = W1 @ W2
        row  IN_F       = b1 @ W2 + b2     (picked up by the ones column of x)
        everything else = 0
    """
    wf = jnp.dot(w1, w2)            # (IN_F, OUT_F)
    bf = jnp.dot(b1, w2) + b2       # (1, OUT_F)
    wf_pad = (
        jnp.zeros((K_PAD, N_PAD), jnp.float32)
        .at[:IN_F, :OUT_F].set(wf)
        .at[IN_F, :OUT_F].set(bf[0])
    )
    return wf_pad


def two_layer_forward(x, wf_pad):
    """x: (B, IN_F) f32; wf_pad: (K_PAD, N_PAD) f32  ->  (B, OUT_F) f32."""
    B = x.shape[0]
    return pl.pallas_call(
        fused_linear_kernel,
        out_shape=jax.ShapeDtypeStruct((B, OUT_F), jnp.float32),
        in_specs=[
            pl.BlockSpec(memory_space=pltpu.MemorySpace.VMEM),   # x, full array
            pl.BlockSpec(memory_space=pltpu.MemorySpace.VMEM),   # fused weight
        ],
        out_specs=pl.BlockSpec(memory_space=pltpu.MemorySpace.VMEM),
        scratch_shapes=[pltpu.VMEM((B, K_PAD), jnp.float32)],    # padded activations
    )(x, wf_pad)


def init_params(key, input_size, output_size, dtype=jnp.float32):
    """Deterministic init mimicking torch.nn.Linear (uniform +/- 1/sqrt(fan_in)).
    Weights stored pre-transposed as (in_features, out_features)."""
    k1, k2, k3, k4 = jax.random.split(key, 4)
    bound1 = 1.0 / (input_size ** 0.5)
    bound2 = 1.0 / (output_size ** 0.5)
    w1 = jax.random.uniform(k1, (input_size, output_size), dtype, -bound1, bound1)
    b1 = jax.random.uniform(k2, (1, output_size), dtype, -bound1, bound1)
    w2 = jax.random.uniform(k3, (output_size, output_size), dtype, -bound2, bound2)
    b2 = jax.random.uniform(k4, (1, output_size), dtype, -bound2, bound2)
    return w1, b1, w2, b2


if __name__ == "__main__":
    batch = 8

    key = jax.random.PRNGKey(0)
    kx, kp = jax.random.split(key)
    x = jax.random.normal(kx, (batch, IN_F), jnp.float32)
    w1, b1, w2, b2 = init_params(kp, IN_F, OUT_F)

    # Fusion + padding + bias folding hoisted out of the per-call path (init time).
    wf_pad = jax.block_until_ready(prepare_fused_params(w1, b1, w2, b2))

    fwd = jax.jit(two_layer_forward)
    out = jax.block_until_ready(fwd(x, wf_pad))

    # Reference: the ORIGINAL un-fused two-layer math in plain JAX.
    ref = (x @ w1 + b1) @ w2 + b2
    assert out.shape == (batch, OUT_F)
    assert jnp.allclose(out, ref, atol=1e-5, rtol=1e-5)

    print("KERNEL_OK")
</pallas_src>

<mosaic_0001>
module attributes {stable_mosaic.version = 11 : i64} {
  func.func @fused_linear_kernel(%arg0: memref<8x10xf32, #tpu.memory_space<vmem>>, %arg1: memref<16x128xf32, #tpu.memory_space<vmem>>, %arg2: memref<8x5xf32, #tpu.memory_space<vmem>>, %arg3: memref<8x16xf32, #tpu.memory_space<vmem>>) attributes {dimension_semantics = [], scalar_prefetch = 0 : i64, scratch_operands = 1 : i64, tpu.core_type = #tpu.core_type<tc>} {
    %0 = tpu.iota {dimensions = array<i32: 1>} : vector<8x16xi32>
    %c10_i32 = arith.constant 10 : i32
    %1 = vector.broadcast %c10_i32 : i32 to vector<8x16xi32>
    %2 = arith.cmpi eq, %0, %1 : vector<8x16xi32>
    %cst = arith.constant 1.000000e+00 : f32
    %cst_0 = arith.constant 0.000000e+00 : f32
    %3 = vector.broadcast %cst : f32 to vector<8x16xf32>
    %4 = vector.broadcast %cst_0 : f32 to vector<8x16xf32>
    %5 = arith.select %2, %3, %4 : vector<8x16xi1>, vector<8x16xf32>
    %c0 = arith.constant 0 : index
    %c0_1 = arith.constant 0 : index
    %6 = vector.load %arg3[%c0, %c0_1] : memref<8x16xf32, #tpu.memory_space<vmem>>, vector<8x16xf32>
    tpu.vector_store %arg3[%c0, %c0_1], %5 {strides = array<i32>} : memref<8x16xf32, #tpu.memory_space<vmem>>, vector<8x16xf32>,
    %c0_2 = arith.constant 0 : index
    %c0_3 = arith.constant 0 : index
    %7 = vector.load %arg0[%c0_2, %c0_3] : memref<8x10xf32, #tpu.memory_space<vmem>>, vector<8x10xf32>
    %c0_4 = arith.constant 0 : index
    %c0_5 = arith.constant 0 : index
    %8 = vector.load %arg3[%c0_4, %c0_5] : memref<8x16xf32, #tpu.memory_space<vmem>>, vector<8x10xf32>
    tpu.vector_store %arg3[%c0_4, %c0_5], %7 {strides = array<i32>} : memref<8x16xf32, #tpu.memory_space<vmem>>, vector<8x10xf32>,
    %c0_6 = arith.constant 0 : index
    %c0_7 = arith.constant 0 : index
    %9 = vector.load %arg3[%c0_6, %c0_7] : memref<8x16xf32, #tpu.memory_space<vmem>>, vector<8x16xf32>
    %c0_8 = arith.constant 0 : index
    %c0_9 = arith.constant 0 : index
    %10 = vector.load %arg1[%c0_8, %c0_9] : memref<16x128xf32, #tpu.memory_space<vmem>>, vector<16x128xf32>
    %cst_10 = arith.constant dense<0.000000e+00> : vector<8x128xf32>
    %11 = tpu.matmul %9, %10, %cst_10 {dimension_numbers = #tpu.dot_dimension_numbers<[1], [0], [0], [1], [0, 0, 1, 1], [], []>} : vector<8x16xf32>, vector<16x128xf32>, vector<8x128xf32> -> vector<8x128xf32>
    %12 = vector.extract_strided_slice %11 {offsets = [0, 0], sizes = [8, 5], strides = [1, 1]} : vector<8x128xf32> to vector<8x5xf32>
    %c0_11 = arith.constant 0 : index
    %c0_12 = arith.constant 0 : index
    %13 = vector.load %arg2[%c0_11, %c0_12] : memref<8x5xf32, #tpu.memory_space<vmem>>, vector<8x5xf32>
    tpu.vector_store %arg2[%c0_11, %c0_12], %12 {strides = array<i32>} : memref<8x5xf32, #tpu.memory_space<vmem>>, vector<8x5xf32>,
    return
  }
}

</mosaic_0001>

<bundles_post_ra>
// kernel: two_layer_forward.1
= control target key start
LH: loop header
LB: loop body
LE: loop exit
PB: predicated region body
PF: predicated region fallthrough
CT: control target
= control target key end

     0   :  { %7 = vsyncpa [#allocation4], 0  ;;  %s301_s0 = inlined_call_operand.hbm [shape: f32[8,10], index: 0, kind: input, shape index: {}]   ;;  %s302_s1 = inlined_call_operand.hbm [shape: f32[16,128], index: 1, kind: input, shape index: {}]   ;;  %s303_s2 = inlined_call_operand.hbm [shape: f32[8,5], index: 2, kind: output, shape index: {}]  }
   0x1   :  { %8 = vsyncpa [#allocation7], 0 }
   0x2   :  { %9 = vsyncpa [#allocation5], 0  ;;  %s235_s9 = smov [#allocation3]   ;;  %s236_s11 = smov [#allocation6]  }
   0x3   :  { %s16_s10 = sshll.u32 %s235_s9, 4  ;;  %s25_s12 = sshll.u32 %s236_s11, 4  ;;  %s17_s10 = int_to_ptr.vmem [resolvable:$true] %s16_s10  ;;  %s258_s12 = int_to_ptr.vmem [resolvable:$true] %s25_s12 }
   0x4   :  { %s163_s15 = scalar_lea.hbm %s301_s0, 128 }
   0x5   :  { %p164_p0 = scmp.ne.s32.totalorder %s301_s0, %s163_s15  ;;  %p167_p1 = scmp.lt.u32.totalorder %s163_s15, %s301_s0 }
   0x7   :  { %p169_p2 = pnand %p167_p1, %p164_p0 }
   0x9   :  { %172 = shalt.err (!%p169_p2)
}
   0xa   :  { %s173_s20 = scalar_lea.vmem %s17_s10, 128  ;;  %p178_p4 = scmp.lt.s32.totalorder %s17_s10, %s17_s10 }
   0xb   :  { %p174_p3 = scmp.ne.s32.totalorder %s17_s10, %s173_s20  ;;  %p179_p5 = scmp.lt.s32.totalorder %s173_s20, %s173_s20 }
   0xd   :  { %p180_p6 = por %p179_p5, %p178_p4 }
   0xf   :  { %p181_p7 = pnand %p180_p6, %p174_p3 }
  0x11   :  { %184 = shalt.err (!%p181_p7)
}
  0x12   :  { %19 = dma.hbm_to_vmem [thread:$0]  %s301_s0, 128, %s17_s10, [#allocation4]  }
  0x13   :  { %s185_s25 = scalar_lea.hbm %s302_s1, 256 }
  0x14   :  { %p186_p8 = scmp.ne.s32.totalorder %s302_s1, %s185_s25  ;;  %p189_p9 = scmp.lt.u32.totalorder %s185_s25, %s302_s1 }
  0x16   :  { %p191_p10 = pnand %p189_p9, %p186_p8 }
  0x18   :  { %194 = shalt.err (!%p191_p10)
}
  0x19   :  { %s195_s30 = scalar_lea.vmem %s258_s12, 256  ;;  %p200_p12 = scmp.lt.s32.totalorder %s258_s12, %s258_s12 }
  0x1a   :  { %p196_p11 = scmp.ne.s32.totalorder %s258_s12, %s195_s30  ;;  %p201_p13 = scmp.lt.s32.totalorder %s195_s30, %s195_s30 }
  0x1c   :  { %p202_p0 = por %p201_p13, %p200_p12 }
  0x1e   :  { %p203_p1 = pnand %p202_p0, %p196_p11 }
  0x20   :  { %206 = shalt.err (!%p203_p1)
}
  0x21   :  { %s237_s0 = smov 128   ;;  %s238_s3 = smov 8  }
  0x22   :  { %31 = dma.hbm_to_vmem [thread:$0]  %s302_s1, 256, %s258_s12, [#allocation7], %s237_s0, %s237_s0, %s238_s3  }
  0x23   :  { %229 = dma.done.wait [#allocation4], 128  }
  0x24   :  { %230 = vsyncadd [#allocation4], 4294967168 }
  0x25   :  { %231 = dma.done.wait [#allocation7], 256  }
  0x26   :  { %232 = vsyncadd [#allocation7], 4294967040  ;;  %v38_v0 = vlaneseq  ;;  %v239_v1 = vmov 0.0|0.0   ;;  %vm240_vm0 = vmmov 0   ;;  %v241_v2 = vmov 0.0   ;;  %v48_v5 = vld [vmem:[#allocation6] sm:$0xff] }
  0x27   :  { %152 = vmatprep.subr.bf16.mxu0 %v239_v1  ;;  %149 = vmatprep.mubr.msk.f32.mxu0 %vm240_vm0, %v241_v2  ;;  %vm42_vm1 = vcmask 130048   ;;  %vm45_vm3 = vcmask 80896   ;;  %v49_v6 = vld [vmem:[#allocation6 + $0x8] sm:$0xff]  ;;  %v44_v7 = vld [vmem:[#allocation3] sm:$0xff]  ;;  %s242_s1 = smov [#allocation8]   ;;  %vm123_vm4 = vcmask 39936  }
  0x28   :  { %v39_v3 = vand.u32 127, %v38_v0  ;;  %v153_v8 = vpack.c.bf16 %v49_v6, %v48_v5  ;;  %s131_s6 = sshll.u32 %s242_s1, 4  ;;  %s132_s6 = int_to_ptr.vmem [resolvable:$true] %s131_s6 }
  0x29   :  { %s207_s7 = scalar_lea.vmem %s132_s6, 128  ;;  %p212_p3 = scmp.lt.s32.totalorder %s132_s6, %s132_s6 }
  0x2a   :  { %vm40_vm2 = vcmp.eq.s32.totalorder %v39_v3, 10  ;;  %154 = vmatpush3.bf16.msra.mxu0 %v153_v8  ;;  %p208_p2 = scmp.ne.s32.totalorder %s132_s6, %s207_s7  ;;  %p213_p4 = scmp.lt.s32.totalorder %s207_s7, %s207_s7 }
  0x2b   :  { %v41_v4 = vsel %vm40_vm2, 1.0, %v241_v2 }
  0x2c   :  { %43 = vst.msk [vmem:[#allocation2] sm:$0xff] %vm42_vm1, %v41_v4  ;;  %p214_p5 = por %p213_p4, %p212_p3 }
  0x2d   :  { %46 = vst.msk [vmem:[#allocation2] sm:$0xff] %vm45_vm3, %v44_v7 }
  0x2e   :  { %p215_p6 = pnand %p214_p5, %p208_p2 }
  0x34   :  { %v47_v9 = vld [vmem:[#allocation2] sm:$0xff] }
  0x35   :  { %150 = vmatmul.mubr.msk.f32.vlgmr.msra.gmra.mrb[0].mxu0 %vm42_vm1, %v47_v9 }
 0x108   :  { %v119_v10 = vpop.f32.mrb[0].mxu0 }
 0x109   :  { %v151_v11 = vpop.f32.mrb[1].mxu0  ;;  %124 = vst.msk [vmem:[#allocation8] sm:$0xff] %vm123_vm4, %v119_v10 }
 0x10a   :  { %218 = shalt.err (!%p215_p6)
}
 0x10b   :  { %s219_s10 = scalar_lea.hbm %s303_s2, 128 }
 0x10c   :  { %p220_p7 = scmp.ne.s32.totalorder %s303_s2, %s219_s10  ;;  %p223_p8 = scmp.lt.u32.totalorder %s219_s10, %s303_s2 }
 0x10e   :  { %p225_p9 = pnand %p223_p8, %p220_p7 }
 0x110   :  { %228 = shalt.err (!%p225_p9)
}
 0x111   :  { %134 = dma.vmem_to_hbm [thread:$0]  %s132_s6, 128, %s303_s2, [#allocation5]  }
 0x112   :  { %233 = dma.done.wait [#allocation5], 128  }
 0x113   :  { %234 = vsyncadd [#allocation5], 4294967168 }
 0x114   :  { %138 = vsyncpa [#allocation4], 1 }
 0x115   :  { %139 = vsyncpa [#allocation7], 1 }
 0x116   :  { %140 = vsyncpa [#allocation5], 1 }

</bundles_post_ra>
